<compile_context>
chip_gen: v6e
topology: v6e:2x2x1
jax: 0.10.0
libtpu: 0.0.40
codegen_flags: <defaults>
</compile_context>

<pallas_src>
import math
import jax
import jax.numpy as jnp
from jax.experimental import pallas as pl
from jax.experimental.pallas import tpu as pltpu


# ---------------------------------------------------------------------------
# Kernel body: one (x + pe) tile; pe broadcasts over the batch dimension.
# ---------------------------------------------------------------------------
def _add_pe_kernel(x_ref, pe_ref, o_ref):
    # x_ref/o_ref: (B, ts, D) or (B, tc);  pe_ref: (ts, D) or (1, tc).
    # Add in pe's (f32) precision, cast once on the way out.
    o_ref[...] = (x_ref[...] + pe_ref[...]).astype(o_ref.dtype)


# ---------------------------------------------------------------------------
# Tile-size selection (byte-targeted, generation-safe)
# ---------------------------------------------------------------------------
_TARGET_BYTES = 12 << 20   # double-buffered block budget: under v5e's 16 MiB
                           # default scoped VMEM and v7x's 32 MiB default.
_MIN_TILES = 4             # >= 4 grid steps so both v7x TensorCores get work.


def _ceil_to(x, m):
    return -(-x // m) * m


def _sublane_mult(itemsize):
    # f32 -> 8 rows, bf16 -> 16, int8/fp8 -> 32 (sublane packing).
    return 8 if itemsize >= 4 else (16 if itemsize == 2 else 32)


def _row_tile(S, B, D, x_isz, pe_isz):
    """Seq-row tile for the D % 128 == 0 path."""
    mult = _sublane_mult(x_isz)
    per_row = 2 * (2 * B * D * x_isz + D * pe_isz)      # dbl-buffered x+out+pe
    ts = _TARGET_BYTES // max(per_row, 1)
    ts = min(ts, pl.cdiv(S, _MIN_TILES))                # keep >=_MIN_TILES steps
    ts = max(mult, (ts // mult) * mult)                 # sublane aligned
    return min(ts, _ceil_to(S, mult))                   # never bigger than needed


def _col_tile(total_cols, B, x_isz, pe_isz):
    """Flattened-column tile for the lane-dense (narrow d_model) path."""
    pad_b = _ceil_to(B, 8)                              # sublane padding of (B, tc)
    per_col = 2 * (2 * pad_b * x_isz + 8 * pe_isz)
    tc = _TARGET_BYTES // max(per_col, 1)
    tc = min(tc, pl.cdiv(total_cols, _MIN_TILES))
    tc = max(128, (tc // 128) * 128)                    # lane aligned (>=128)
    return min(tc, _ceil_to(total_cols, 128))


def _compiler_params(est_block_bytes):
    kwargs = dict(dimension_semantics=("parallel",))
    if est_block_bytes > (14 << 20):
        # Pathological B*D: raise the scoped-VMEM limit (v5e default is 16 MiB)
        # but stay well under v7x's 64 MiB physical VMEM.
        kwargs["vmem_limit_bytes"] = min(int(est_block_bytes) + (4 << 20), 48 << 20)
    return pltpu.CompilerParams(**kwargs)


# ---------------------------------------------------------------------------
# Forward wrapper
# ---------------------------------------------------------------------------
def add_positional_encoding(x, pe):
    """x: (B, S, D); pe: (max_len, D) f32 buffer. Returns x + pe[:S] (dtype of x)."""
    B, S, D = x.shape
    max_len = pe.shape[0]
    assert pe.shape == (max_len, D) and max_len >= S

    x_isz = jnp.dtype(x.dtype).itemsize
    pe_isz = jnp.dtype(pe.dtype).itemsize

    if D % 128 == 0:
        # ---- natural layout: last dim already lane-dense --------------------
        ts = _row_tile(S, B, D, x_isz, pe_isz)
        est = 2 * ts * (2 * B * D * x_isz + D * pe_isz)
        return pl.pallas_call(
            _add_pe_kernel,
            out_shape=jax.ShapeDtypeStruct((B, S, D), x.dtype),
            grid=(pl.cdiv(S, ts),),
            in_specs=[
                pl.BlockSpec((B, ts, D), lambda s: (0, s, 0)),
                # full (max_len, D) table; grid only touches the first blocks
                pl.BlockSpec((ts, D), lambda s: (s, 0)),
            ],
            out_specs=pl.BlockSpec((B, ts, D), lambda s: (0, s, 0)),
            compiler_params=_compiler_params(est),
        )(x, pe)

    # ---- lane-dense path for narrow / unaligned d_model ---------------------
    # Present x as (B, S*D) and pe as (1, max_len*D): pure reshapes (free under
    # jit); flattened pe positions < S*D coincide with pe[:S] flattened, so no
    # per-call slice of the table.  Output stores become wide 128-lane slabs.
    total = S * D
    x2 = x.reshape(B, total)
    pe2 = pe.reshape(1, max_len * D)
    tc = _col_tile(total, B, x_isz, pe_isz)
    est = 2 * tc * (2 * _ceil_to(B, 8) * x_isz + 8 * pe_isz)
    out = pl.pallas_call(
        _add_pe_kernel,
        out_shape=jax.ShapeDtypeStruct((B, total), x.dtype),
        grid=(pl.cdiv(total, tc),),
        in_specs=[
            pl.BlockSpec((B, tc), lambda c: (0, c)),
            pl.BlockSpec((1, tc), lambda c: (0, c)),
        ],
        out_specs=pl.BlockSpec((B, tc), lambda c: (0, c)),
        compiler_params=_compiler_params(est),
    )(x2, pe2)
    return out.reshape(B, S, D)


# ---------------------------------------------------------------------------
# "Module" construction (matches the PyTorch register_buffer precomputation)
# ---------------------------------------------------------------------------
def make_positional_encoding(d_model, max_len=5000, dtype=jnp.float32):
    position = jnp.arange(max_len, dtype=jnp.float32)[:, None]              # (L, 1)
    div_term = jnp.exp(jnp.arange(0, d_model, 2, dtype=jnp.float32)
                       * (-math.log(10000.0) / d_model))                    # (ceil(D/2),)
    ang = position * div_term                                               # (L, ceil(D/2))
    pe = jnp.zeros((max_len, d_model), jnp.float32)
    pe = pe.at[:, 0::2].set(jnp.sin(ang))
    pe = pe.at[:, 1::2].set(jnp.cos(ang[:, : d_model // 2]))                # odd-D safe
    return pe.astype(dtype)


@jax.jit
def positional_encoding_forward(x, pe):
    """Equivalent of PositionalEncoding.forward(x)."""
    return add_positional_encoding(x, pe)


# ---------------------------------------------------------------------------
if __name__ == "__main__":
    key = jax.random.PRNGKey(0)
    k_small, k_big = jax.random.split(key)

    # --- small shape consistent with the transformer (lane-dense flat path) --
    B, S, D = 2, 8, 32
    pe = make_positional_encoding(D, max_len=5000)
    x = jax.random.normal(k_small, (B, S, D), jnp.float32)
    y = jax.block_until_ready(positional_encoding_forward(x, pe))
    ref = x + pe[None, :S, :]
    assert y.shape == (B, S, D), y.shape
    assert bool(jnp.all(jnp.isfinite(y)))
    assert bool(jnp.allclose(y, ref, rtol=1e-6, atol=1e-6)), "mismatch (flat path)"

    # --- larger, 128-aligned d_model (natural tiled path) --------------------
    B2, S2, D2 = 4, 1024, 256
    pe2 = make_positional_encoding(D2, max_len=2048)
    x2 = jax.random.normal(k_big, (B2, S2, D2), jnp.float32)
    y2 = jax.block_until_ready(positional_encoding_forward(x2, pe2))
    ref2 = x2 + pe2[None, :S2, :]
    assert bool(jnp.allclose(y2, ref2, rtol=1e-6, atol=1e-6)), "mismatch (tiled path)"

    print("KERNEL_OK")
</pallas_src>

<mosaic_0001>
module attributes {stable_mosaic.version = 11 : i64} {
  func.func @_add_pe_kernel(%arg0: i32, %arg1: memref<2x128xf32, #tpu.memory_space<vmem>>, %arg2: memref<1x128xf32, #tpu.memory_space<vmem>>, %arg3: memref<2x128xf32, #tpu.memory_space<vmem>>) attributes {dimension_semantics = [#tpu.dimension_semantics<parallel>], iteration_bounds = array<i64: 2>, scalar_prefetch = 0 : i64, scratch_operands = 0 : i64, tpu.core_type = #tpu.core_type<tc>, window_params = [{transform_indices = @transform_0, window_bounds = array<i64: 2, 128>}, {transform_indices = @transform_1, window_bounds = array<i64: 1, 128>}, {transform_indices = @transform_2, window_bounds = array<i64: 2, 128>}]} {
    %c0 = arith.constant 0 : index
    %c0_0 = arith.constant 0 : index
    %0 = vector.load %arg1[%c0, %c0_0] : memref<2x128xf32, #tpu.memory_space<vmem>>, vector<2x128xf32>
    %c0_1 = arith.constant 0 : index
    %c0_2 = arith.constant 0 : index
    %1 = vector.load %arg2[%c0_1, %c0_2] : memref<1x128xf32, #tpu.memory_space<vmem>>, vector<1x128xf32>
    %2 = vector.broadcast %1 : vector<1x128xf32> to vector<2x128xf32>
    %3 = arith.addf %0, %2 : vector<2x128xf32>
    %c0_3 = arith.constant 0 : index
    %c0_4 = arith.constant 0 : index
    %4 = vector.load %arg3[%c0_3, %c0_4] : memref<2x128xf32, #tpu.memory_space<vmem>>, vector<2x128xf32>
    tpu.vector_store %arg3[%c0_3, %c0_4], %3 {strides = array<i32>} : memref<2x128xf32, #tpu.memory_space<vmem>>, vector<2x128xf32>,
    return
  }
  func.func @transform_0(%arg0: i32) -> (i32, i32) {
    %c0_i32 = arith.constant 0 : i32
    %c0_i32_0 = arith.constant 0 : i32
    return %c0_i32, %arg0 : i32, i32
  }
  func.func @transform_1(%arg0: i32) -> (i32, i32) {
    %c0_i32 = arith.constant 0 : i32
    %c0_i32_0 = arith.constant 0 : i32
    return %c0_i32, %arg0 : i32, i32
  }
  func.func @transform_2(%arg0: i32) -> (i32, i32) {
    %c0_i32 = arith.constant 0 : i32
    %c0_i32_0 = arith.constant 0 : i32
    return %c0_i32, %arg0 : i32, i32
  }
}

</mosaic_0001>

<bundles_post_ra>
// kernel: positional_encoding_forward.1
= control target key start
LH: loop header
LB: loop body
LE: loop exit
PB: predicated region body
PF: predicated region fallthrough
CT: control target
= control target key end

     0   :  { %s247_s9 = smov 0   ;;  %s275_s0 = inlined_call_operand.vmem [shape: f32[2,256], index: 0, kind: input, shape index: {}]   ;;  %s276_s1 = inlined_call_operand.vmem [shape: f32[1,160000], index: 1, kind: input, shape index: {}]   ;;  %s277_s2 = inlined_call_operand.vmem [shape: f32[2,256], index: 2, kind: output, shape index: {}]  }
   0x1 LB: > { %s225_s10 = sadd.s32 4294967295, %s249_s9   ;;  %p229_p0 = scmp.ge.s32.totalorder %s249_s9, 1  ;;  %s249_s9 = sphi %s247_s9, %s12_s9  }
   0x2   : > { %p119_p1 = scmp.lt.s32.totalorder %s249_s9, 3 }
   0x4   : > { %p120_p2 = pnand %p229_p0, %p119_p1 }
   0x5   : > { %p142_p3 = scmp.lt.s32.totalorder (!%p120_p2), %s225_s10, 1  ;;  %p146_p4 = scmp.lt.s32.totalorder (!%p120_p2), %s225_s10, 1249 }
   0x6   : > { %123 = sbr.rel (%p120_p2) target bundleno = 19 (0x13), region = 28 }
   0xb   : > { %s143_s11 = scalar_select %p142_p3, %s225_s10, 1 }
   0xc   : > { %s279_s10 = smov (!%p146_p4, %s225_s10), 1249 }
   0xd   : > { %s230_s12 = sshll.u32 %s143_s11, 1  ;;  %s148_s18 = scalar_lea.vmem %s276_s1, %s279_s10 }
   0xe   : > { %s145_s15 = scalar_lea.vmem %s275_s0, %s230_s12  ;;  %s152_s21 = scalar_lea.vmem %s277_s2, %s230_s12  ;;  %v232_v1 = vld [vmem:[%s148_s18] ss:$0 sm:$0xff] }
   0xf   : > { %v153_v0 = vld [vmem:[%s145_s15] sm:$0x3] }
  0x10   : > { %v161_v2 = vadd.f32 %v232_v1, %v153_v0 }
  0x12   : > { %162 = vst [vmem:[%s152_s21] sm:$0x3] %v161_v2 }
  0x13 PF: > { %s12_s9 = sadd.s32 1, %s249_s9  }
  0x14   : > { %p9_p5 = scmp.ge.s32.totalorder %s12_s9, 4  }
  0x16   :  { %11 = sbr.rel (!%p9_p5) target bundleno = 1 (0x1), region = 61 }

</bundles_post_ra>
